<compile_context>
chip_gen: v6e
topology: v6e:2x2x1
jax: 0.10.0
libtpu: 0.0.40
codegen_flags: <defaults>
</compile_context>

<pallas_src>
import math
from functools import partial

import jax
import jax.numpy as jnp
from jax.experimental import pallas as pl
from jax.experimental.pallas import tpu as pltpu


# ----------------------------------------------------------------------------
# Pallas kernel
# ----------------------------------------------------------------------------
def rnf_lstm_kernel(x_ref, wih_ref, whh_ref, bias_ref, out_ref, *,
                    b_tile, s_pad, n_win, filtsz):
    # x_ref   : (b_tile * s_pad, C) compute dtype (bf16 or f32) -- flattened
    #           (batch, position) rows; position stride per batch row = s_pad.
    # wih_ref : (C, 4H) compute dtype (transposed weight_ih, gate order i,f,g,o)
    # whh_ref : (H, 4H) compute dtype (transposed weight_hh)
    # bias_ref: (1, 4H) float32 (b_ih + b_hh)
    # out_ref : (b_tile, H) float32 -- max over the n_win windows per batch row
    H = whh_ref.shape[0]
    cdt = whh_ref.dtype

    wih = wih_ref[...]
    whh = whh_ref[...]
    bias = bias_ref[...]                       # (1, 4H) f32

    # Hoisted input projection: one big MXU matmul covering every position and
    # therefore every (window, timestep) pair.  f32 accumulation.
    xg = jnp.dot(x_ref[...], wih, preferred_element_type=jnp.float32)  # (rows, 4H)

    # Recurrent state rows: one row per window start position.  Windows with
    # start >= n_win read into the next batch row (garbage) and are discarded
    # before the max-pool; this keeps every per-step slice contiguous.
    n_rec = (b_tile - 1) * s_pad + n_win
    h = jnp.zeros((n_rec, H), jnp.float32)
    c = jnp.zeros((n_rec, H), jnp.float32)

    # filtsz is small -> statically unrolled; only h @ whh stays serial.
    for t in range(filtsz):
        gates = (xg[t:t + n_rec, :]
                 + jnp.dot(h.astype(cdt), whh, preferred_element_type=jnp.float32)
                 + bias)                                          # (n_rec, 4H) f32
        i_g = jax.nn.sigmoid(gates[:, 0 * H:1 * H])
        f_g = jax.nn.sigmoid(gates[:, 1 * H:2 * H])
        g_g = jnp.tanh(gates[:, 2 * H:3 * H])
        o_g = jax.nn.sigmoid(gates[:, 3 * H:4 * H])
        c = f_g * c + i_g * g_g
        h = o_g * jnp.tanh(c)

    # Max over the n_win valid windows of each batch row (== btc.max(1)[0]).
    for b in range(b_tile):
        base = b * s_pad                                          # 8-aligned
        out_ref[pl.ds(b, 1), :] = jnp.max(h[base:base + n_win, :],
                                          axis=0, keepdims=True)


# ----------------------------------------------------------------------------
# Tiling heuristic
# ----------------------------------------------------------------------------
def _choose_b_tile(B, T, s_pad, C, H, itemsize, vmem_budget=24 << 20):
    """Pick batch rows per grid step: >=256 matmul rows, under a VMEM budget
    that also fits v7x's 64 MiB (scoped default 32 MiB)."""
    target_rows = 256
    bt = max(1, -(-target_rows // T))

    def vmem_bytes(bt):
        x_in = 2 * bt * s_pad * C * itemsize                       # dbl-buffered input
        xg = bt * s_pad * 4 * H * 4                                # f32 projection
        live = 4 * ((bt - 1) * s_pad + T) * 4 * H * 4              # gates/h/c temporaries
        w = 2 * (C + H + 1) * 4 * H * itemsize                     # weights (dbl-buffered)
        return x_in + xg + live + w

    while bt > 1 and vmem_bytes(bt) > vmem_budget:
        bt -= 1
    bt = min(bt, B)
    if bt < B:
        # multiple output blocks -> keep the output block sublane-aligned
        bt = min(B, ((bt + 7) // 8) * 8)
    # v7x megacore: prefer >=2 grid steps when each step still gets big matmuls
    if bt == B and B > 1 and (B // 2) * T >= target_rows:
        half = -(-B // 2)
        bt = min(B, ((half + 7) // 8) * 8)
    return max(1, min(bt, B))


# ----------------------------------------------------------------------------
# Wrapper (jit-able; mxlen/filtsz are static)
# ----------------------------------------------------------------------------
@partial(jax.jit, static_argnames=("filtsz", "mxlen", "compute_dtype", "b_tile"))
def rnf_forward(btc, lengths, params, *, filtsz, mxlen,
                compute_dtype=jnp.bfloat16, b_tile=None):
    """Pallas implementation of RNF.forward((btc, lengths)).

    `mxlen` = max(max(lengths), filtsz + 1) is resolved host-side ONCE by the
    caller so the whole forward is traceable (no device->host sync here).
    `lengths` is otherwise unused (the PyTorch module applies no length mask).
    Dropout -> identity (inference).
    """
    del lengths
    B, S, C = btc.shape
    wih_t, whh_t, bias = params
    H = whh_t.shape[0]

    mxlen = min(int(mxlen), S)
    assert mxlen >= filtsz, "need at least one n-gram window"
    T = mxlen - filtsz + 1                       # windows per batch row
    S_pad = ((mxlen + 7) // 8) * 8               # sublane-aligned position stride

    itemsize = jnp.dtype(compute_dtype).itemsize
    if b_tile is None:
        b_tile = _choose_b_tile(B, T, S_pad, C, H, itemsize)
    num_blocks = pl.cdiv(B, b_tile)
    B_pad = num_blocks * b_tile

    # No n-gram stack: just the (possibly padded) input, flattened to 2D so the
    # kernel's input projection is a single large matmul.
    x = btc[:, :mxlen, :].astype(compute_dtype)
    x = jnp.pad(x, ((0, B_pad - B), (0, S_pad - mxlen), (0, 0)))
    x2d = x.reshape(B_pad * S_pad, C)

    wih_c = wih_t.astype(compute_dtype)
    whh_c = whh_t.astype(compute_dtype)
    bias_f = bias.astype(jnp.float32)

    kernel = pl.pallas_call(
        partial(rnf_lstm_kernel, b_tile=b_tile, s_pad=S_pad,
                n_win=T, filtsz=filtsz),
        out_shape=jax.ShapeDtypeStruct((B_pad, H), jnp.float32),
        grid=(num_blocks,),
        in_specs=[
            pl.BlockSpec((b_tile * S_pad, C), lambda i: (i, 0)),
            pl.BlockSpec((C, 4 * H), lambda i: (0, 0)),
            pl.BlockSpec((H, 4 * H), lambda i: (0, 0)),
            pl.BlockSpec((1, 4 * H), lambda i: (0, 0)),
        ],
        out_specs=pl.BlockSpec((b_tile, H), lambda i: (i, 0)),
        compiler_params=pltpu.CompilerParams(
            dimension_semantics=("parallel",),
            vmem_limit_bytes=32 * 1024 * 1024,
        ),
    )
    out = kernel(x2d, wih_c, whh_c, bias_f)      # (B_pad, H)
    return out[:B]


# ----------------------------------------------------------------------------
# Pure-JAX reference (mirrors the PyTorch forward + the same dtype policy)
# ----------------------------------------------------------------------------
def rnf_reference(btc, lengths, params, filtsz, mxlen,
                  compute_dtype=jnp.bfloat16):
    del lengths
    wih_t, whh_t, bias = params
    H = whh_t.shape[0]
    B, S, C = btc.shape
    mxlen = min(int(mxlen), S)
    T = mxlen - filtsz + 1
    btfc = jnp.stack([btc[:, i:i + filtsz, :] for i in range(T)], axis=1)
    x = btfc.reshape(B * T, filtsz, C).astype(compute_dtype)
    wih = wih_t.astype(compute_dtype)
    whh = whh_t.astype(compute_dtype)
    bias = bias.astype(jnp.float32)
    h = jnp.zeros((B * T, H), jnp.float32)
    c = jnp.zeros((B * T, H), jnp.float32)
    for t in range(filtsz):
        gates = (jnp.dot(x[:, t, :], wih, preferred_element_type=jnp.float32)
                 + jnp.dot(h.astype(compute_dtype), whh,
                           preferred_element_type=jnp.float32)
                 + bias)
        i_g = jax.nn.sigmoid(gates[:, 0 * H:1 * H])
        f_g = jax.nn.sigmoid(gates[:, 1 * H:2 * H])
        g_g = jnp.tanh(gates[:, 2 * H:3 * H])
        o_g = jax.nn.sigmoid(gates[:, 3 * H:4 * H])
        c = f_g * c + i_g * g_g
        h = o_g * jnp.tanh(c)
    return h.reshape(B, T, H).max(axis=1)


# ----------------------------------------------------------------------------
# Main
# ----------------------------------------------------------------------------
if __name__ == "__main__":
    # Small deterministic setup consistent with the module:
    #   input_dim (C) = 32, rnnsz (H) = 32, filtsz = 3, batch = 2, seq = 8
    B, S, C, H, filtsz = 2, 8, 32, 32, 3

    key = jax.random.PRNGKey(0)
    k_x, k_wih, k_whh, k_bih, k_bhh = jax.random.split(key, 5)

    btc = jax.random.normal(k_x, (B, S, C), dtype=jnp.float32)
    lengths = jnp.array([8, 5], dtype=jnp.int32)

    # PyTorch-style LSTM params, uniform(-1/sqrt(H), 1/sqrt(H)), gate order
    # (i, f, g, o), stored pre-transposed for the kernel matmuls.
    scale = 1.0 / math.sqrt(H)
    wih_t = jax.random.uniform(k_wih, (C, 4 * H), jnp.float32, -scale, scale)
    whh_t = jax.random.uniform(k_whh, (H, 4 * H), jnp.float32, -scale, scale)
    b_ih = jax.random.uniform(k_bih, (1, 4 * H), jnp.float32, -scale, scale)
    b_hh = jax.random.uniform(k_bhh, (1, 4 * H), jnp.float32, -scale, scale)
    bias = b_ih + b_hh
    params = (wih_t, whh_t, bias)

    # mxlen = max(max(lengths), filtsz + 1): resolved ONCE on the host so the
    # jitted forward sees it as a static shape parameter (no sync in hot path).
    mxlen = max(int(jnp.max(lengths)), filtsz + 1)

    out = rnf_forward(btc, lengths, params, filtsz=filtsz, mxlen=mxlen)
    out = jax.block_until_ready(out)

    ref = rnf_reference(btc, lengths, params, filtsz, mxlen)
    assert out.shape == (B, H), out.shape
    err = float(jnp.max(jnp.abs(out - ref)))
    assert jnp.allclose(out, ref, atol=2e-3, rtol=2e-3), f"max abs err {err}"

    print("KERNEL_OK")
</pallas_src>

<mosaic_0001>
module attributes {stable_mosaic.version = 11 : i64} {
  func.func @rnf_lstm_kernel(%arg0: i32, %arg1: memref<16x32xbf16, #tpu.memory_space<vmem>>, %arg2: memref<32x128xbf16, #tpu.memory_space<vmem>>, %arg3: memref<32x128xbf16, #tpu.memory_space<vmem>>, %arg4: memref<1x128xf32, #tpu.memory_space<vmem>>, %arg5: memref<2x32xf32, #tpu.memory_space<vmem>>) attributes {dimension_semantics = [#tpu.dimension_semantics<parallel>], iteration_bounds = array<i64: 1>, scalar_prefetch = 0 : i64, scratch_operands = 0 : i64, tpu.core_type = #tpu.core_type<tc>, window_params = [{transform_indices = @transform_0, window_bounds = array<i64: 16, 32>}, {pipeline_mode = #tpu.pipeline_mode<synchronous>, transform_indices = @transform_1, window_bounds = array<i64: 32, 128>}, {pipeline_mode = #tpu.pipeline_mode<synchronous>, transform_indices = @transform_2, window_bounds = array<i64: 32, 128>}, {pipeline_mode = #tpu.pipeline_mode<synchronous>, transform_indices = @transform_3, window_bounds = array<i64: 1, 128>}, {transform_indices = @transform_4, window_bounds = array<i64: 2, 32>}]} {
    %c0 = arith.constant 0 : index
    %c0_0 = arith.constant 0 : index
    %0 = vector.load %arg2[%c0, %c0_0] : memref<32x128xbf16, #tpu.memory_space<vmem>>, vector<32x128xbf16>
    %c0_1 = arith.constant 0 : index
    %c0_2 = arith.constant 0 : index
    %1 = vector.load %arg3[%c0_1, %c0_2] : memref<32x128xbf16, #tpu.memory_space<vmem>>, vector<32x128xbf16>
    %c0_3 = arith.constant 0 : index
    %c0_4 = arith.constant 0 : index
    %2 = vector.load %arg4[%c0_3, %c0_4] : memref<1x128xf32, #tpu.memory_space<vmem>>, vector<1x128xf32>
    %c0_5 = arith.constant 0 : index
    %c0_6 = arith.constant 0 : index
    %3 = vector.load %arg1[%c0_5, %c0_6] : memref<16x32xbf16, #tpu.memory_space<vmem>>, vector<16x32xbf16>
    %cst = arith.constant dense<0.000000e+00> : vector<16x128xf32>
    %4 = tpu.matmul %3, %0, %cst {dimension_numbers = #tpu.dot_dimension_numbers<[1], [0], [0], [1], [0, 0, 1, 1], [], []>} : vector<16x32xbf16>, vector<32x128xbf16>, vector<16x128xf32> -> vector<16x128xf32>
    %cst_7 = arith.constant 0.000000e+00 : f32
    %5 = vector.broadcast %cst_7 : f32 to vector<14x32xf32>
    %cst_8 = arith.constant 0.000000e+00 : f32
    %6 = vector.broadcast %cst_8 : f32 to vector<14x32xf32>
    %7 = vector.extract_strided_slice %4 {offsets = [0, 0], sizes = [14, 128], strides = [1, 1]} : vector<16x128xf32> to vector<14x128xf32>
    %8 = arith.truncf %5 : vector<14x32xf32> to vector<14x32xbf16>
    %cst_9 = arith.constant dense<0.000000e+00> : vector<14x128xf32>
    %9 = tpu.matmul %8, %1, %cst_9 {dimension_numbers = #tpu.dot_dimension_numbers<[1], [0], [0], [1], [0, 0, 1, 1], [], []>} : vector<14x32xbf16>, vector<32x128xbf16>, vector<14x128xf32> -> vector<14x128xf32>
    %10 = arith.addf %7, %9 : vector<14x128xf32>
    %11 = vector.broadcast %2 : vector<1x128xf32> to vector<14x128xf32>
    %12 = arith.addf %10, %11 : vector<14x128xf32>
    %13 = vector.extract_strided_slice %12 {offsets = [0, 0], sizes = [14, 32], strides = [1, 1]} : vector<14x128xf32> to vector<14x32xf32>
    %14 = arith.negf %13 : vector<14x32xf32>
    %15 = math.exp %14 : vector<14x32xf32>
    %cst_10 = arith.constant 1.000000e+00 : f32
    %16 = vector.broadcast %cst_10 : f32 to vector<14x32xf32>
    %17 = arith.addf %16, %15 : vector<14x32xf32>
    %18 = arith.divf %16, %17 : vector<14x32xf32>
    %19 = vector.extract_strided_slice %12 {offsets = [0, 32], sizes = [14, 32], strides = [1, 1]} : vector<14x128xf32> to vector<14x32xf32>
    %20 = arith.negf %19 : vector<14x32xf32>
    %21 = math.exp %20 : vector<14x32xf32>
    %cst_11 = arith.constant 1.000000e+00 : f32
    %22 = vector.broadcast %cst_11 : f32 to vector<14x32xf32>
    %23 = arith.addf %22, %21 : vector<14x32xf32>
    %24 = arith.divf %22, %23 : vector<14x32xf32>
    %25 = vector.extract_strided_slice %12 {offsets = [0, 64], sizes = [14, 32], strides = [1, 1]} : vector<14x128xf32> to vector<14x32xf32>
    %26 = math.tanh %25 : vector<14x32xf32>
    %27 = vector.extract_strided_slice %12 {offsets = [0, 96], sizes = [14, 32], strides = [1, 1]} : vector<14x128xf32> to vector<14x32xf32>
    %28 = arith.negf %27 : vector<14x32xf32>
    %29 = math.exp %28 : vector<14x32xf32>
    %cst_12 = arith.constant 1.000000e+00 : f32
    %30 = vector.broadcast %cst_12 : f32 to vector<14x32xf32>
    %31 = arith.addf %30, %29 : vector<14x32xf32>
    %32 = arith.divf %30, %31 : vector<14x32xf32>
    %33 = arith.mulf %24, %6 : vector<14x32xf32>
    %34 = arith.mulf %18, %26 : vector<14x32xf32>
    %35 = arith.addf %33, %34 : vector<14x32xf32>
    %36 = math.tanh %35 : vector<14x32xf32>
    %37 = arith.mulf %32, %36 : vector<14x32xf32>
    %38 = vector.extract_strided_slice %4 {offsets = [1, 0], sizes = [14, 128], strides = [1, 1]} : vector<16x128xf32> to vector<14x128xf32>
    %39 = arith.truncf %37 : vector<14x32xf32> to vector<14x32xbf16>
    %cst_13 = arith.constant dense<0.000000e+00> : vector<14x128xf32>
    %40 = tpu.matmul %39, %1, %cst_13 {dimension_numbers = #tpu.dot_dimension_numbers<[1], [0], [0], [1], [0, 0, 1, 1], [], []>} : vector<14x32xbf16>, vector<32x128xbf16>, vector<14x128xf32> -> vector<14x128xf32>
    %41 = arith.addf %38, %40 : vector<14x128xf32>
    %42 = vector.broadcast %2 : vector<1x128xf32> to vector<14x128xf32>
    %43 = arith.addf %41, %42 : vector<14x128xf32>
    %44 = vector.extract_strided_slice %43 {offsets = [0, 0], sizes = [14, 32], strides = [1, 1]} : vector<14x128xf32> to vector<14x32xf32>
    %45 = arith.negf %44 : vector<14x32xf32>
    %46 = math.exp %45 : vector<14x32xf32>
    %cst_14 = arith.constant 1.000000e+00 : f32
    %47 = vector.broadcast %cst_14 : f32 to vector<14x32xf32>
    %48 = arith.addf %47, %46 : vector<14x32xf32>
    %49 = arith.divf %47, %48 : vector<14x32xf32>
    %50 = vector.extract_strided_slice %43 {offsets = [0, 32], sizes = [14, 32], strides = [1, 1]} : vector<14x128xf32> to vector<14x32xf32>
    %51 = arith.negf %50 : vector<14x32xf32>
    %52 = math.exp %51 : vector<14x32xf32>
    %cst_15 = arith.constant 1.000000e+00 : f32
    %53 = vector.broadcast %cst_15 : f32 to vector<14x32xf32>
    %54 = arith.addf %53, %52 : vector<14x32xf32>
    %55 = arith.divf %53, %54 : vector<14x32xf32>
    %56 = vector.extract_strided_slice %43 {offsets = [0, 64], sizes = [14, 32], strides = [1, 1]} : vector<14x128xf32> to vector<14x32xf32>
    %57 = math.tanh %56 : vector<14x32xf32>
    %58 = vector.extract_strided_slice %43 {offsets = [0, 96], sizes = [14, 32], strides = [1, 1]} : vector<14x128xf32> to vector<14x32xf32>
    %59 = arith.negf %58 : vector<14x32xf32>
    %60 = math.exp %59 : vector<14x32xf32>
    %cst_16 = arith.constant 1.000000e+00 : f32
    %61 = vector.broadcast %cst_16 : f32 to vector<14x32xf32>
    %62 = arith.addf %61, %60 : vector<14x32xf32>
    %63 = arith.divf %61, %62 : vector<14x32xf32>
    %64 = arith.mulf %55, %35 : vector<14x32xf32>
    %65 = arith.mulf %49, %57 : vector<14x32xf32>
    %66 = arith.addf %64, %65 : vector<14x32xf32>
    %67 = math.tanh %66 : vector<14x32xf32>
    %68 = arith.mulf %63, %67 : vector<14x32xf32>
    %69 = vector.extract_strided_slice %4 {offsets = [2, 0], sizes = [14, 128], strides = [1, 1]} : vector<16x128xf32> to vector<14x128xf32>
    %70 = arith.truncf %68 : vector<14x32xf32> to vector<14x32xbf16>
    %cst_17 = arith.constant dense<0.000000e+00> : vector<14x128xf32>
    %71 = tpu.matmul %70, %1, %cst_17 {dimension_numbers = #tpu.dot_dimension_numbers<[1], [0], [0], [1], [0, 0, 1, 1], [], []>} : vector<14x32xbf16>, vector<32x128xbf16>, vector<14x128xf32> -> vector<14x128xf32>
    %72 = arith.addf %69, %71 : vector<14x128xf32>
    %73 = vector.broadcast %2 : vector<1x128xf32> to vector<14x128xf32>
    %74 = arith.addf %72, %73 : vector<14x128xf32>
    %75 = vector.extract_strided_slice %74 {offsets = [0, 0], sizes = [14, 32], strides = [1, 1]} : vector<14x128xf32> to vector<14x32xf32>
    %76 = arith.negf %75 : vector<14x32xf32>
    %77 = math.exp %76 : vector<14x32xf32>
    %cst_18 = arith.constant 1.000000e+00 : f32
    %78 = vector.broadcast %cst_18 : f32 to vector<14x32xf32>
    %79 = arith.addf %78, %77 : vector<14x32xf32>
    %80 = arith.divf %78, %79 : vector<14x32xf32>
    %81 = vector.extract_strided_slice %74 {offsets = [0, 32], sizes = [14, 32], strides = [1, 1]} : vector<14x128xf32> to vector<14x32xf32>
    %82 = arith.negf %81 : vector<14x32xf32>
    %83 = math.exp %82 : vector<14x32xf32>
    %cst_19 = arith.constant 1.000000e+00 : f32
    %84 = vector.broadcast %cst_19 : f32 to vector<14x32xf32>
    %85 = arith.addf %84, %83 : vector<14x32xf32>
    %86 = arith.divf %84, %85 : vector<14x32xf32>
    %87 = vector.extract_strided_slice %74 {offsets = [0, 64], sizes = [14, 32], strides = [1, 1]} : vector<14x128xf32> to vector<14x32xf32>
    %88 = math.tanh %87 : vector<14x32xf32>
    %89 = vector.extract_strided_slice %74 {offsets = [0, 96], sizes = [14, 32], strides = [1, 1]} : vector<14x128xf32> to vector<14x32xf32>
    %90 = arith.negf %89 : vector<14x32xf32>
    %91 = math.exp %90 : vector<14x32xf32>
    %cst_20 = arith.constant 1.000000e+00 : f32
    %92 = vector.broadcast %cst_20 : f32 to vector<14x32xf32>
    %93 = arith.addf %92, %91 : vector<14x32xf32>
    %94 = arith.divf %92, %93 : vector<14x32xf32>
    %95 = arith.mulf %86, %66 : vector<14x32xf32>
    %96 = arith.mulf %80, %88 : vector<14x32xf32>
    %97 = arith.addf %95, %96 : vector<14x32xf32>
    %98 = math.tanh %97 : vector<14x32xf32>
    %99 = arith.mulf %94, %98 : vector<14x32xf32>
    %100 = vector.extract_strided_slice %99 {offsets = [0, 0], sizes = [6, 32], strides = [1, 1]} : vector<14x32xf32> to vector<6x32xf32>
    %cst_21 = arith.constant dense<0xFF800000> : vector<32xf32>
    %101 = vector.multi_reduction <maximumf>, %100, %cst_21 [0] : vector<6x32xf32> to vector<32xf32>
    %102 = vector.shape_cast %101 : vector<32xf32> to vector<1x32xf32>
    %c0_22 = arith.constant 0 : index
    %c0_23 = arith.constant 0 : index
    %103 = vector.load %arg5[%c0_22, %c0_23] : memref<2x32xf32, #tpu.memory_space<vmem>>, vector<1x32xf32>
    tpu.vector_store %arg5[%c0_22, %c0_23], %102 {strides = array<i32>} : memref<2x32xf32, #tpu.memory_space<vmem>>, vector<1x32xf32>,
    %104 = vector.extract_strided_slice %99 {offsets = [8, 0], sizes = [6, 32], strides = [1, 1]} : vector<14x32xf32> to vector<6x32xf32>
    %cst_24 = arith.constant dense<0xFF800000> : vector<32xf32>
    %105 = vector.multi_reduction <maximumf>, %104, %cst_24 [0] : vector<6x32xf32> to vector<32xf32>
    %106 = vector.shape_cast %105 : vector<32xf32> to vector<1x32xf32>
    %c1 = arith.constant 1 : index
    %c0_25 = arith.constant 0 : index
    %107 = vector.load %arg5[%c1, %c0_25] : memref<2x32xf32, #tpu.memory_space<vmem>>, vector<1x32xf32>
    tpu.vector_store %arg5[%c1, %c0_25], %106 {strides = array<i32>} : memref<2x32xf32, #tpu.memory_space<vmem>>, vector<1x32xf32>,
    return
  }
  func.func @transform_0(%arg0: i32) -> (i32, i32) {
    %c0_i32 = arith.constant 0 : i32
    %c0_i32_0 = arith.constant 0 : i32
    return %arg0, %c0_i32 : i32, i32
  }
  func.func @transform_1(%arg0: i32) -> (i32, i32) {
    %c0_i32 = arith.constant 0 : i32
    %c0_i32_0 = arith.constant 0 : i32
    %c0_i32_1 = arith.constant 0 : i32
    return %c0_i32, %c0_i32_0 : i32, i32
  }
  func.func @transform_2(%arg0: i32) -> (i32, i32) {
    %c0_i32 = arith.constant 0 : i32
    %c0_i32_0 = arith.constant 0 : i32
    %c0_i32_1 = arith.constant 0 : i32
    return %c0_i32, %c0_i32_0 : i32, i32
  }
  func.func @transform_3(%arg0: i32) -> (i32, i32) {
    %c0_i32 = arith.constant 0 : i32
    %c0_i32_0 = arith.constant 0 : i32
    %c0_i32_1 = arith.constant 0 : i32
    return %c0_i32, %c0_i32_0 : i32, i32
  }
  func.func @transform_4(%arg0: i32) -> (i32, i32) {
    %c0_i32 = arith.constant 0 : i32
    %c0_i32_0 = arith.constant 0 : i32
    return %arg0, %c0_i32 : i32, i32
  }
}

</mosaic_0001>

<bundles_post_ra>
// kernel: rnf_forward.1
= control target key start
LH: loop header
LB: loop body
LE: loop exit
PB: predicated region body
PF: predicated region fallthrough
CT: control target
= control target key end

     0   :  { %v622_v1 = vmov 0.0   ;;  %vm623_vm0 = vmmov 0   ;;  %s724_s0 = inlined_call_operand.vmem [shape: bf16[16,32], index: 0, kind: input, shape index: {}]   ;;  %s725_s1 = inlined_call_operand.vmem [shape: bf16[32,128], index: 1, kind: input, shape index: {}]   ;;  %s726_s2 = inlined_call_operand.vmem [shape: bf16[32,128], index: 2, kind: input, shape index: {}]   ;;  %s727_s3 = inlined_call_operand.vmem [shape: f32[1,128], index: 3, kind: input, shape index: {}]   ;;  %s728_s4 = inlined_call_operand.hbm [shape: f32[2,32], index: 4, kind: output, shape index: {}]  }
   0x1   :  { %v547_v0 = vld [vmem:[%s725_s1 + $0x8] sm:$0xff]   ;;  %509 = vmatprep.subr.bf16.mxu0 %v622_v1  ;;  %517 = vmatprep.subr.bf16.mxu1 %v622_v1  ;;  %v549_v3 = vld [vmem:[%s725_s1] sm:$0xff]  }
   0x2   :  { %v548_v2 = vld [vmem:[%s726_s2 + $0x8] sm:$0xff]   ;;  %510 = vmatpush3.bf16.msra.mxu0 %v547_v0  ;;  %513 = vmatprep.mubr.msk.bf16.mxu0 %vm623_vm0, %v622_v1  ;;  %v550_v4 = vld [vmem:[%s726_s2] sm:$0xff]  }
   0x3   :  { %518 = vmatpush3.bf16.msra.mxu1 %v548_v2  ;;  %511 = vmatprep.subr.bf16.mxu0 %v622_v1  ;;  %v551_v5 = vld [vmem:[%s724_s0] sm:$0xff]  }
   0x4   :  { %519 = vmatprep.subr.bf16.mxu1 %v622_v1  ;;  %521 = vmatprep.mubr.msk.bf16.mxu1 %vm623_vm0, %v622_v1 }
   0x5   :  { %9 = vsyncpa [#allocation3], 0  ;;  %vm47_vm1 = vcmask 261120   ;;  %v624_v6 = vmov 0   ;;  %v678_v8 = vld [vmem:[%s727_s3] ss:$0 sm:$0xff] }
   0x6   :  { %512 = vmatpush3.bf16.msra.mxu0 %v549_v3  ;;  %s625_s2 = smov 64   ;;  %s626_s3 = smov 32   ;;  %vm256_vm2 = vcmask 1040384   ;;  %vm377_vm3 = vcmask 1041408   ;;  %vm442_vm4 = vcmask 1048322   ;;  %vm454_vm5 = vcmask 253952  }
   0x7   :  { %520 = vmatpush3.bf16.msra.mxu1 %v550_v4  ;;  %525 = vmatprep.subr.bf16.mxu0 %v622_v1  ;;  %s627_s25 = smov [#allocation2]  }
   0x8   :  { %533 = vmatprep.subr.bf16.mxu1 %v622_v1  ;;  %s474_s26 = sshll.u32 %s627_s25, 4  ;;  %s475_s26 = int_to_ptr.vmem [resolvable:$true] %s474_s26 }
   0x9   :  { %514 = vmatmul.mubr.msk.bf16.vlgmr.msra.gmra.mxu0 %vm47_vm1, %v551_v5  ;;  %s600_s27 = scalar_lea.vmem %s475_s26, 32  ;;  %p605_p1 = scmp.lt.s32.totalorder %s475_s26, %s475_s26 }
   0xa   :  { %522 = vmatmul.mubr.bf16.vlgmr.msra.gmra.mxu1 %v624_v6  ;;  %526 = vmatpush3.bf16.msra.mxu0 %v548_v2  ;;  %p601_p0 = scmp.ne.s32.totalorder %s475_s26, %s600_s27  ;;  %p606_p2 = scmp.lt.s32.totalorder %s600_s27, %s600_s27 }
   0xb   :  { %527 = vmatprep.subr.bf16.mxu0 %v622_v1  ;;  %529 = vmatprep.mubr.msk.bf16.mxu0 %vm623_vm0, %v622_v1 }
   0xc   :  { %534 = vmatpush3.bf16.msra.mxu1 %v548_v2  ;;  %537 = vmatprep.mubr.msk.bf16.mxu1 %vm623_vm0, %v622_v1  ;;  %p607_p3 = por %p606_p2, %p605_p1 }
   0xd   :  { %535 = vmatprep.subr.bf16.mxu1 %v622_v1 }
   0xe   :  { %528 = vmatpush3.bf16.msra.mxu0 %v550_v4  ;;  %p608_p4 = pnand %p607_p3, %p601_p0 }
  0x10   :  { %536 = vmatpush3.bf16.msra.mxu1 %v550_v4 }
  0xc9   :  { %v673_v7 = vpop.f32.mrf.mxu0 }
  0xca   :  { %v141_v9 = vpop.f32.mrf.mxu1 }
  0xcb   :  { %v148_v10 = vadd.f32 %v141_v9, %v673_v7  ;;  %v515_v11 = vpop.f32.mrf.mxu0 }
  0xcc   :  { %v523_v12 = vpop.f32.mrf.mxu1 }
  0xcd   :  { %v156_v13 = vadd.f32 %v678_v8, %v148_v10  ;;  %v682_v14 = vpop.f32.mrf.mxu0 }
  0xce   :  { %v144_v15 = vpop.f32.mrf.mxu1 }
  0xcf   :  { %552 = vtanh.f32 %v156_v13  ;;  %v149_v16 = vadd.f32 %v144_v15, %v682_v14  ;;  %v516_v17 = vpop.f32.mrf.mxu0  ;;  %v489_v22 = vmul.f32 -1.442695, %v156_v13 }
  0xd0   :  { %v524_v18 = vpop.f32.mrf.mxu1 }
  0xd1   :  { %v157_v19 = vadd.f32 %v678_v8, %v149_v16 }
  0xd3   :  { %554 = vtanh.f32 %v157_v19  ;;  %v490_v23 = vmul.f32 -1.442695, %v157_v19 }
  0xd4   :  { %556 = vpow2.f32 %v489_v22 }
  0xd5   :  { %558 = vpow2.f32 %v490_v23 }
  0xdc   :  { %v553_v20 = vpop.eup %552 }
  0xdd   :  { %176 = vrot.lane.b32.xlu0 %v553_v20, %s625_s2 }
  0xe0   :  { %v555_v21 = vpop.eup %554 }
  0xe1   :  { %178 = vrot.lane.b32.xlu0 %v555_v21, %s625_s2  ;;  %v557_v24 = vpop.eup %556 }
  0xe2   :  { %v164_v25 = vadd.f32 1.0, %v557_v24  ;;  %v559_v26 = vpop.eup %558 }
  0xe3   :  { %v165_v27 = vadd.f32 1.0, %v559_v26 }
  0xe4   :  { %560 = vrcp.f32 %v164_v25 }
  0xe5   :  { %562 = vrcp.f32 %v165_v27 }
  0xf1   :  { %v561_v28 = vpop.eup %560 }
  0xf2   :  { %v563_v31 = vpop.eup %562  ;;  %v172_v34 = vmul.f32 0.0, %v561_v28 }
  0xf3   :  { %v173_v37 = vmul.f32 0.0, %v563_v31 }
 0x14f   :  { %v177_v29 = vpop.permute.xlu0 %176 }
 0x150   :  { %v182_v30 = vmul.f32 %v561_v28, %v177_v29 }
 0x152   :  { %186 = vrot.lane.b32.xlu1 %v182_v30, %s626_s3 }
 0x153   :  { %v179_v32 = vpop.permute.xlu0 %178 }
 0x154   :  { %v183_v33 = vmul.f32 %v563_v31, %v179_v32 }
 0x156   :  { %188 = vrot.lane.b32.xlu1 %v183_v33, %s626_s3 }
 0x1c4   :  { %v187_v35 = vpop.permute.xlu1 %186 }
 0x1c5   :  { %v192_v36 = vadd.f32 %v187_v35, %v172_v34 }
 0x1c7   :  { %564 = vtanh.f32 %v192_v36  ;;  %v282_v40 = vrot.slane %v192_v36, 7 }
 0x1c8   :  { %v189_v38 = vpop.permute.xlu1 %188 }
 0x1c9   :  { %v193_v39 = vadd.f32 %v189_v38, %v173_v37 }
 0x1cb   :  { %566 = vtanh.f32 %v193_v39  ;;  %v283_v41 = vrot.slane %v193_v39, 7 }
 0x1cd   :  { %v284_v42 = vsel %vm256_vm2, %v282_v40, %v283_v41 }
 0x1d4   :  { %v565_v43 = vpop.eup %564 }
 0x1d5   :  { %198 = vrot.lane.b32.xlu0 %v565_v43, %s625_s2 }
 0x1d8   :  { %v567_v44 = vpop.eup %566 }
 0x1d9   :  { %200 = vrot.lane.b32.xlu1 %v567_v44, %s625_s2 }
 0x247   :  { %v199_v45 = vpop.permute.xlu0 %198 }
 0x248   :  { %v204_v47 = vmul.f32 %v561_v28, %v199_v45 }
 0x24b   :  { %v201_v46 = vpop.permute.xlu1 %200 }
 0x24c   :  { %v205_v48 = vmul.f32 %v563_v31, %v201_v46 }
 0x24e   :  { %v206_v49 = vpack.c.bf16 %v205_v48, %v204_v47 }
 0x250   :  { %208 = vrot.lane.b32.xlu0 %v206_v49, %s626_s3 }
 0x2c2   :  { %v209_v50 = vpop.permute.xlu0 %208 }
 0x2c3   :  { %530 = vmatmul.mubr.msk.bf16.vlgmr.msra.gmra.mxu0 %vm47_vm1, %v209_v50 }
 0x383   :  { %v247_v51 = vpop.f32.mrf.mxu0 }
 0x384   :  { %v257_v52 = vrot.slane %v247_v51, 7 }
 0x385   :  { %v531_v53 = vpop.f32.mrf.mxu0 }
 0x386   :  { %v262_v54 = vadd.f32 %v257_v52, %v673_v7 }
 0x387   :  { %v250_v55 = vpop.f32.mrf.mxu0 }
 0x388   :  { %v264_v56 = vadd.f32 %v678_v8, %v262_v54  ;;  %v258_v57 = vrot.slane %v250_v55, 7 }
 0x389   :  { %v532_v58 = vpop.f32.mrf.mxu0 }
 0x38a   :  { %568 = vtanh.f32 %v264_v56  ;;  %v259_v59 = vsel %vm256_vm2, %v257_v52, %v258_v57  ;;  %v492_v0 = vmul.f32 -1.442695, %v264_v56 }
 0x38b   :  { %v263_v60 = vadd.f32 %v259_v59, %v682_v14 }
 0x38d   :  { %v265_v61 = vadd.f32 %v678_v8, %v263_v60 }
 0x38f   :  { %570 = vtanh.f32 %v265_v61  ;;  %v493_v1 = vmul.f32 -1.442695, %v265_v61 }
 0x390   :  { %572 = vpow2.f32 %v492_v0 }
 0x391   :  { %574 = vpow2.f32 %v493_v1 }
 0x397   :  { %v569_v62 = vpop.eup %568 }
 0x398   :  { %291 = vrot.lane.b32.xlu1 %v569_v62, %s625_s2 }
 0x39c   :  { %v571_v63 = vpop.eup %570 }
 0x39d   :  { %293 = vrot.lane.b32.xlu0 %v571_v63, %s625_s2  ;;  %v573_v2 = vpop.eup %572 }
 0x39e   :  { %v272_v3 = vadd.f32 1.0, %v573_v2  ;;  %v575_v4 = vpop.eup %574 }
 0x39f   :  { %v273_v5 = vadd.f32 1.0, %v575_v4 }
 0x3a0   :  { %576 = vrcp.f32 %v272_v3 }
 0x3a1   :  { %578 = vrcp.f32 %v273_v5 }
 0x3ad   :  { %v577_v6 = vpop.eup %576 }
 0x3ae   :  { %v579_v11 = vpop.eup %578  ;;  %v287_v15 = vmul.f32 %v577_v6, %v282_v40 }
 0x3af   :  { %v288_v18 = vmul.f32 %v579_v11, %v284_v42 }
 0x40a   :  { %v292_v9 = vpop.permute.xlu1 %291 }
 0x40b   :  { %v297_v10 = vmul.f32 %v577_v6, %v292_v9 }
 0x40d   :  { %301 = vrot.lane.b32.xlu1 %v297_v10, %s626_s3 }
 0x40f   :  { %v294_v12 = vpop.permute.xlu0 %293 }
 0x410   :  { %v298_v13 = vmul.f32 %v579_v11, %v294_v12 }
 0x412   :  { %303 = vrot.lane.b32.xlu0 %v298_v13, %s626_s3 }
 0x47f   :  { %v302_v16 = vpop.permute.xlu1 %301 }
 0x480   :  { %v307_v17 = vadd.f32 %v302_v16, %v287_v15 }
 0x482   :  { %580 = vtanh.f32 %v307_v17  ;;  %v403_v21 = vrot.slane %v307_v17, 7 }
 0x484   :  { %v304_v19 = vpop.permute.xlu0 %303 }
 0x485   :  { %v308_v20 = vadd.f32 %v304_v19, %v288_v18 }
 0x487   :  { %582 = vtanh.f32 %v308_v20  ;;  %v404_v22 = vrot.slane %v308_v20, 7 }
 0x489   :  { %v405_v23 = vsel %vm256_vm2, %v403_v21, %v404_v22 }
 0x48f   :  { %v581_v24 = vpop.eup %580 }
 0x490   :  { %313 = vrot.lane.b32.xlu1 %v581_v24, %s625_s2 }
 0x494   :  { %v583_v25 = vpop.eup %582 }
 0x495   :  { %315 = vrot.lane.b32.xlu0 %v583_v25, %s625_s2 }
 0x502   :  { %v314_v26 = vpop.permute.xlu1 %313 }
 0x503   :  { %v319_v28 = vmul.f32 %v577_v6, %v314_v26 }
 0x507   :  { %v316_v27 = vpop.permute.xlu0 %315 }
 0x508   :  { %v320_v29 = vmul.f32 %v579_v11, %v316_v27 }
 0x50a   :  { %v321_v30 = vpack.c.bf16 %v320_v29, %v319_v28 }
 0x50c   :  { %v325_v31 = vshll.u32 %v321_v30, 16  ;;  %v323_v32 = vshrl.u32 %v321_v30, 16 }
 0x50e   :  { %v327_v33 = vrot.slane %v325_v31, 1 }
 0x510   :  { %v328_v34 = vor.u32 %v327_v33, %v323_v32 }
 0x512   :  { %329 = vrot.lane.b32.xlu1 %v328_v34, %s626_s3 }
 0x584   :  { %v330_v35 = vpop.permute.xlu1 %329 }
 0x585   :  { %538 = vmatmul.mubr.msk.bf16.vlgmr.msra.gmra.mxu1 %vm47_vm1, %v330_v35 }
 0x645   :  { %v368_v36 = vpop.f32.mrf.mxu1 }
 0x646   :  { %v378_v37 = vrot.slane %v368_v36, 6 }
 0x647   :  { %v539_v38 = vpop.f32.mrf.mxu1 }
 0x648   :  { %v383_v39 = vadd.f32 %v378_v37, %v673_v7 }
 0x649   :  { %v371_v40 = vpop.f32.mrf.mxu1 }
 0x64a   :  { %v385_v41 = vadd.f32 %v678_v8, %v383_v39  ;;  %v379_v42 = vrot.slane %v371_v40, 6 }
 0x64b   :  { %v540_v43 = vpop.f32.mrf.mxu1 }
 0x64c   :  { %584 = vtanh.f32 %v385_v41  ;;  %v380_v44 = vsel %vm377_vm3, %v378_v37, %v379_v42  ;;  %v495_v7 = vmul.f32 -1.442695, %v385_v41 }
 0x64d   :  { %v384_v45 = vadd.f32 %v380_v44, %v682_v14 }
 0x64f   :  { %v386_v46 = vadd.f32 %v678_v8, %v384_v45 }
 0x651   :  { %586 = vtanh.f32 %v386_v46  ;;  %v496_v49 = vmul.f32 -1.442695, %v386_v46 }
 0x652   :  { %588 = vpow2.f32 %v495_v7 }
 0x653   :  { %590 = vpow2.f32 %v496_v49 }
 0x659   :  { %v585_v47 = vpop.eup %584 }
 0x65a   :  { %412 = vrot.lane.b32.xlu0 %v585_v47, %s625_s2 }
 0x65e   :  { %v587_v48 = vpop.eup %586 }
 0x65f   :  { %414 = vrot.lane.b32.xlu1 %v587_v48, %s625_s2  ;;  %v589_v50 = vpop.eup %588 }
 0x660   :  { %v393_v51 = vadd.f32 1.0, %v589_v50  ;;  %v591_v52 = vpop.eup %590 }
 0x661   :  { %v394_v53 = vadd.f32 1.0, %v591_v52 }
 0x662   :  { %592 = vrcp.f32 %v393_v51 }
 0x663   :  { %594 = vrcp.f32 %v394_v53 }
 0x66f   :  { %v593_v14 = vpop.eup %592 }
 0x670   :  { %v595_v55 = vpop.eup %594  ;;  %v408_v58 = vmul.f32 %v593_v14, %v403_v21 }
 0x671   :  { %v409_v61 = vmul.f32 %v595_v55, %v405_v23 }
 0x6cc   :  { %v413_v54 = vpop.permute.xlu0 %412 }
 0x6cd   :  { %v418_v8 = vmul.f32 %v593_v14, %v413_v54 }
 0x6cf   :  { %422 = vrot.lane.b32.xlu0 %v418_v8, %s626_s3 }
 0x6d1   :  { %v415_v56 = vpop.permute.xlu1 %414 }
 0x6d2   :  { %v419_v57 = vmul.f32 %v595_v55, %v415_v56 }
 0x6d4   :  { %424 = vrot.lane.b32.xlu1 %v419_v57, %s626_s3 }
 0x741   :  { %v423_v59 = vpop.permute.xlu0 %422 }
 0x742   :  { %v428_v60 = vadd.f32 %v423_v59, %v408_v58 }
 0x744   :  { %596 = vtanh.f32 %v428_v60 }
 0x746   :  { %v425_v62 = vpop.permute.xlu1 %424 }
 0x747   :  { %v429_v63 = vadd.f32 %v425_v62, %v409_v61 }
 0x749   :  { %598 = vtanh.f32 %v429_v63 }
 0x751   :  { %v597_v0 = vpop.eup %596 }
 0x752   :  { %434 = vrot.lane.b32.xlu0 %v597_v0, %s625_s2 }
 0x756   :  { %v599_v1 = vpop.eup %598 }
 0x757   :  { %436 = vrot.lane.b32.xlu1 %v599_v1, %s625_s2 }
 0x7c4   :  { %v435_v2 = vpop.permute.xlu0 %434 }
 0x7c5   :  { %v440_v3 = vmul.f32 %v593_v14, %v435_v2 }
 0x7c7   :  { %v443_v4 = vsel %vm442_vm4, %v440_v3, -inf }
 0x7c8   :  { %v444_v5 = vrot.slane %v443_v4, 4 }
 0x7c9   :  { %v437_v6 = vpop.permute.xlu1 %436 }
 0x7ca   :  { %v445_v9 = vmax.f32 %v443_v4, %v444_v5  ;;  %v441_v10 = vmul.f32 %v595_v55, %v437_v6 }
 0x7cc   :  { %v446_v11 = vrot.slane %v445_v9, 2  ;;  %v456_v12 = vsel %vm442_vm4, %v441_v10, -inf }
 0x7cd   :  { %v457_v13 = vrot.slane %v456_v12, 4 }
 0x7ce   :  { %v447_v15 = vmax.f32 %v445_v9, %v446_v11 }
 0x7cf   :  { %v458_v16 = vmax.f32 %v456_v12, %v457_v13 }
 0x7d0   :  { %v448_v17 = vrot.slane %v447_v15, 1 }
 0x7d1   :  { %v459_v18 = vrot.slane %v458_v16, 2 }
 0x7d2   :  { %v449_v19 = vmax.f32 %v447_v15, %v448_v17 }
 0x7d3   :  { %v460_v20 = vmax.f32 %v458_v16, %v459_v18 }
 0x7d4   :  { %451 = vrot.lane.b32.xlu0 %v449_v19, %s626_s3 }
 0x7d5   :  { %v461_v21 = vrot.slane %v460_v20, 1 }
 0x7d7   :  { %v462_v22 = vmax.f32 %v460_v20, %v461_v21 }
 0x7d9   :  { %464 = vrot.lane.b32.xlu1 %v462_v22, %s626_s3 }
 0x846   :  { %v452_v23 = vpop.permute.xlu0 %451 }
 0x847   :  { %455 = vst.msk [vmem:[#allocation2] sm:$0x1] %vm454_vm5, %v452_v23 }
 0x84b   :  { %v465_v24 = vpop.permute.xlu1 %464 }
 0x84c   :  { %467 = vst.msk [vmem:[#allocation2 + $0x1] sm:$0x1] %vm454_vm5, %v465_v24 }
 0x84d   :  { %611 = shalt.err (!%p608_p4)
}
 0x84e   :  { %477 = dma.vmem_to_hbm [thread:$0]  %s475_s26, 32, %s728_s4, [#allocation3]  }
 0x84f   :  { %620 = dma.done.wait [#allocation3], 32  }
 0x850   :  { %621 = vsyncadd [#allocation3], 4294967264 }
 0x851   :  { %481 = vsyncpa [#allocation3], 1 }

</bundles_post_ra>
